<compile_context>
chip_gen: v7x
topology: tpu7x:2x2x1
jax: 0.10.0
libtpu: 0.0.40
codegen_flags: <defaults>
</compile_context>

<pallas_src>
import functools

import jax
import jax.numpy as jnp
from jax import lax
from jax.experimental import pallas as pl
from jax.experimental.pallas import tpu as pltpu

HIDDEN = 128
LANES = 128


def _round_up(n, m):
    return (n + m - 1) // m * m


def dueling_kernel(x_ref, w1_ref, b1_ref, w2_ref, b2_ref, wh_ref, bh_ref, q_ref, *, ac):
    # x tile: (TB, obs_pad) bf16; weights bf16; biases f32.
    x = x_ref[...]

    # Trunk: Linear(obs,128) -> ReLU -> Linear(128,128) -> ReLU  (bf16 MXU, f32 accumulate)
    h1 = jnp.dot(x, w1_ref[...], preferred_element_type=jnp.float32) + b1_ref[...]
    h1 = jnp.maximum(h1, 0.0)
    h2 = jnp.dot(h1.astype(jnp.bfloat16), w2_ref[...],
                 preferred_element_type=jnp.float32) + b2_ref[...]
    h2 = jnp.maximum(h2, 0.0)                                         # (TB, 128) f32

    # Fused heads: columns [0, ac) = advantage, column ac = value, rest zero-padded.
    heads = jnp.dot(h2.astype(jnp.bfloat16), wh_ref[...],
                    preferred_element_type=jnp.float32) + bh_ref[...]  # (TB, 128) f32

    col = lax.broadcasted_iota(jnp.int32, heads.shape, 1)
    adv_sum = jnp.sum(jnp.where(col < ac, heads, 0.0), axis=1, keepdims=True)
    value = jnp.sum(jnp.where(col == ac, heads, 0.0), axis=1, keepdims=True)
    adv_mean = adv_sum * (1.0 / ac)                                    # mean over valid lanes only

    # Lane-dense store; padded columns hold junk and are sliced off in the wrapper.
    q_ref[...] = (value + heads - adv_mean).astype(q_ref.dtype)


@jax.jit
def dueling_forward(x, params):
    w1, b1, w2, b2, wv, bv, wa, ba = params
    B, obs = x.shape
    hidden = w1.shape[1]
    ac = wa.shape[1]

    obs_pad = _round_up(obs, LANES)
    head_pad = _round_up(ac + 1, LANES)
    TB = 256 if B >= 256 else _round_up(max(B, 8), 8)
    B_pad = _round_up(B, TB)

    # Padding / bf16 casts / head fusion (static-shape layout plumbing in the wrapper).
    x_p = jnp.zeros((B_pad, obs_pad), jnp.bfloat16).at[:B, :obs].set(x.astype(jnp.bfloat16))
    w1_p = jnp.zeros((obs_pad, hidden), jnp.bfloat16).at[:obs, :].set(w1.astype(jnp.bfloat16))
    w2_b = w2.astype(jnp.bfloat16)
    b1_f = b1.astype(jnp.float32)
    b2_f = b2.astype(jnp.float32)
    wh = jnp.zeros((hidden, head_pad), jnp.bfloat16)
    wh = wh.at[:, :ac].set(wa.astype(jnp.bfloat16))
    wh = wh.at[:, ac:ac + 1].set(wv.astype(jnp.bfloat16))
    bh = jnp.zeros((1, head_pad), jnp.float32)
    bh = bh.at[:, :ac].set(ba.astype(jnp.float32)).at[:, ac:ac + 1].set(bv.astype(jnp.float32))

    flops = 2 * B_pad * (obs_pad * hidden + hidden * hidden + hidden * head_pad)
    bytes_accessed = (
        x_p.size * 2 + w1_p.size * 2 + w2_b.size * 2 + wh.size * 2
        + (b1_f.size + b2_f.size + bh.size) * 4 + B_pad * head_pad * 4
    )
    cost = pl.CostEstimate(flops=flops, transcendentals=0, bytes_accessed=bytes_accessed)

    const = lambda i: (0, 0)
    q_pad = pl.pallas_call(
        functools.partial(dueling_kernel, ac=ac),
        out_shape=jax.ShapeDtypeStruct((B_pad, head_pad), jnp.float32),
        grid=(B_pad // TB,),
        in_specs=[
            pl.BlockSpec((TB, obs_pad), lambda i: (i, 0)),     # x tile (pipelined)
            pl.BlockSpec((obs_pad, hidden), const),            # W1 (resident)
            pl.BlockSpec((1, hidden), const),                  # b1
            pl.BlockSpec((hidden, hidden), const),             # W2
            pl.BlockSpec((1, hidden), const),                  # b2
            pl.BlockSpec((hidden, head_pad), const),           # fused head weights
            pl.BlockSpec((1, head_pad), const),                # fused head bias
        ],
        out_specs=pl.BlockSpec((TB, head_pad), lambda i: (i, 0)),
        compiler_params=pltpu.CompilerParams(dimension_semantics=("parallel",)),
        cost_estimate=cost,
    )(x_p, w1_p, b1_f, w2_b, b2_f, wh, bh)

    return q_pad[:B, :ac]


def init_params(key, obs, ac, hidden=HIDDEN):
    """PyTorch-style uniform(+/- 1/sqrt(fan_in)) init; weights stored as (in, out)."""
    ks = jax.random.split(key, 8)

    def linear(kw, kb, fan_in, fan_out):
        bound = 1.0 / jnp.sqrt(jnp.float32(fan_in))
        w = jax.random.uniform(kw, (fan_in, fan_out), jnp.float32, -bound, bound)
        b = jax.random.uniform(kb, (1, fan_out), jnp.float32, -bound, bound)
        return w, b

    w1, b1 = linear(ks[0], ks[1], obs, hidden)
    w2, b2 = linear(ks[2], ks[3], hidden, hidden)
    wv, bv = linear(ks[4], ks[5], hidden, 1)
    wa, ba = linear(ks[6], ks[7], hidden, ac)
    return (w1, b1, w2, b2, wv, bv, wa, ba)


def reference_forward(x, params):
    w1, b1, w2, b2, wv, bv, wa, ba = params
    h = jnp.maximum(x @ w1 + b1, 0.0)
    h = jnp.maximum(h @ w2 + b2, 0.0)
    v = h @ wv + bv
    a = h @ wa + ba
    return v + a - a.mean(axis=1, keepdims=True)


if __name__ == "__main__":
    key = jax.random.PRNGKey(0)
    k_x, k_p = jax.random.split(key)

    B, OBS, AC = 8, 32, 8
    x = jax.random.normal(k_x, (B, OBS), jnp.float32)
    params = init_params(k_p, OBS, AC)

    q = dueling_forward(x, params)
    q = jax.block_until_ready(q)

    q_ref = reference_forward(x, params)
    assert q.shape == (B, AC)
    # bf16 MXU operands with f32 accumulation -> relaxed tolerance vs f32 reference.
    assert jnp.allclose(q, q_ref, atol=3e-2, rtol=3e-2), "mismatch vs reference"

    print("KERNEL_OK")
</pallas_src>

<mosaic_0001>
module attributes {stable_mosaic.version = 11 : i64} {
  func.func @dueling_kernel(%arg0: i32, %arg1: memref<8x128xbf16, #tpu.memory_space<vmem>>, %arg2: memref<128x128xbf16, #tpu.memory_space<vmem>>, %arg3: memref<1x128xf32, #tpu.memory_space<vmem>>, %arg4: memref<128x128xbf16, #tpu.memory_space<vmem>>, %arg5: memref<1x128xf32, #tpu.memory_space<vmem>>, %arg6: memref<128x128xbf16, #tpu.memory_space<vmem>>, %arg7: memref<1x128xf32, #tpu.memory_space<vmem>>, %arg8: memref<8x128xf32, #tpu.memory_space<vmem>>) attributes {dimension_semantics = [#tpu.dimension_semantics<parallel>], iteration_bounds = array<i64: 1>, scalar_prefetch = 0 : i64, scratch_operands = 0 : i64, tpu.core_type = #tpu.core_type<tc>, window_params = [{transform_indices = @transform_0, window_bounds = array<i64: 8, 128>}, {pipeline_mode = #tpu.pipeline_mode<synchronous>, transform_indices = @transform_1, window_bounds = array<i64: 128, 128>}, {pipeline_mode = #tpu.pipeline_mode<synchronous>, transform_indices = @transform_2, window_bounds = array<i64: 1, 128>}, {pipeline_mode = #tpu.pipeline_mode<synchronous>, transform_indices = @transform_3, window_bounds = array<i64: 128, 128>}, {pipeline_mode = #tpu.pipeline_mode<synchronous>, transform_indices = @transform_4, window_bounds = array<i64: 1, 128>}, {pipeline_mode = #tpu.pipeline_mode<synchronous>, transform_indices = @transform_5, window_bounds = array<i64: 128, 128>}, {pipeline_mode = #tpu.pipeline_mode<synchronous>, transform_indices = @transform_6, window_bounds = array<i64: 1, 128>}, {transform_indices = @transform_7, window_bounds = array<i64: 8, 128>}]} {
    %c0 = arith.constant 0 : index
    %c0_0 = arith.constant 0 : index
    %0 = vector.load %arg1[%c0, %c0_0] : memref<8x128xbf16, #tpu.memory_space<vmem>>, vector<8x128xbf16>
    %c0_1 = arith.constant 0 : index
    %c0_2 = arith.constant 0 : index
    %1 = vector.load %arg2[%c0_1, %c0_2] : memref<128x128xbf16, #tpu.memory_space<vmem>>, vector<128x128xbf16>
    %cst = arith.constant dense<0.000000e+00> : vector<8x128xf32>
    %2 = tpu.matmul %0, %1, %cst {dimension_numbers = #tpu.dot_dimension_numbers<[1], [0], [0], [1], [0, 0, 1, 1], [], []>} : vector<8x128xbf16>, vector<128x128xbf16>, vector<8x128xf32> -> vector<8x128xf32>
    %c0_3 = arith.constant 0 : index
    %c0_4 = arith.constant 0 : index
    %3 = vector.load %arg3[%c0_3, %c0_4] : memref<1x128xf32, #tpu.memory_space<vmem>>, vector<1x128xf32>
    %4 = vector.broadcast %3 : vector<1x128xf32> to vector<8x128xf32>
    %5 = arith.addf %2, %4 : vector<8x128xf32>
    %cst_5 = arith.constant 0.000000e+00 : f32
    %6 = vector.broadcast %cst_5 : f32 to vector<8x128xf32>
    %7 = arith.maximumf %5, %6 : vector<8x128xf32>
    %8 = arith.truncf %7 : vector<8x128xf32> to vector<8x128xbf16>
    %c0_6 = arith.constant 0 : index
    %c0_7 = arith.constant 0 : index
    %9 = vector.load %arg4[%c0_6, %c0_7] : memref<128x128xbf16, #tpu.memory_space<vmem>>, vector<128x128xbf16>
    %cst_8 = arith.constant dense<0.000000e+00> : vector<8x128xf32>
    %10 = tpu.matmul %8, %9, %cst_8 {dimension_numbers = #tpu.dot_dimension_numbers<[1], [0], [0], [1], [0, 0, 1, 1], [], []>} : vector<8x128xbf16>, vector<128x128xbf16>, vector<8x128xf32> -> vector<8x128xf32>
    %c0_9 = arith.constant 0 : index
    %c0_10 = arith.constant 0 : index
    %11 = vector.load %arg5[%c0_9, %c0_10] : memref<1x128xf32, #tpu.memory_space<vmem>>, vector<1x128xf32>
    %12 = vector.broadcast %11 : vector<1x128xf32> to vector<8x128xf32>
    %13 = arith.addf %10, %12 : vector<8x128xf32>
    %cst_11 = arith.constant 0.000000e+00 : f32
    %14 = vector.broadcast %cst_11 : f32 to vector<8x128xf32>
    %15 = arith.maximumf %13, %14 : vector<8x128xf32>
    %16 = arith.truncf %15 : vector<8x128xf32> to vector<8x128xbf16>
    %c0_12 = arith.constant 0 : index
    %c0_13 = arith.constant 0 : index
    %17 = vector.load %arg6[%c0_12, %c0_13] : memref<128x128xbf16, #tpu.memory_space<vmem>>, vector<128x128xbf16>
    %cst_14 = arith.constant dense<0.000000e+00> : vector<8x128xf32>
    %18 = tpu.matmul %16, %17, %cst_14 {dimension_numbers = #tpu.dot_dimension_numbers<[1], [0], [0], [1], [0, 0, 1, 1], [], []>} : vector<8x128xbf16>, vector<128x128xbf16>, vector<8x128xf32> -> vector<8x128xf32>
    %c0_15 = arith.constant 0 : index
    %c0_16 = arith.constant 0 : index
    %19 = vector.load %arg7[%c0_15, %c0_16] : memref<1x128xf32, #tpu.memory_space<vmem>>, vector<1x128xf32>
    %20 = vector.broadcast %19 : vector<1x128xf32> to vector<8x128xf32>
    %21 = arith.addf %18, %20 : vector<8x128xf32>
    %22 = tpu.iota {dimensions = array<i32: 1>} : vector<8x128xi32>
    %c8_i32 = arith.constant 8 : i32
    %23 = vector.broadcast %c8_i32 : i32 to vector<8x128xi32>
    %24 = arith.cmpi slt, %22, %23 : vector<8x128xi32>
    %cst_17 = arith.constant 0.000000e+00 : f32
    %25 = vector.broadcast %cst_17 : f32 to vector<8x128xf32>
    %26 = arith.select %24, %21, %25 : vector<8x128xi1>, vector<8x128xf32>
    %cst_18 = arith.constant dense<0.000000e+00> : vector<8xf32>
    %27 = vector.multi_reduction <add>, %26, %cst_18 [1] : vector<8x128xf32> to vector<8xf32>
    %28 = vector.shape_cast %27 : vector<8xf32> to vector<8x1xf32>
    %c8_i32_19 = arith.constant 8 : i32
    %29 = vector.broadcast %c8_i32_19 : i32 to vector<8x128xi32>
    %30 = arith.cmpi eq, %22, %29 : vector<8x128xi32>
    %cst_20 = arith.constant 0.000000e+00 : f32
    %31 = vector.broadcast %cst_20 : f32 to vector<8x128xf32>
    %32 = arith.select %30, %21, %31 : vector<8x128xi1>, vector<8x128xf32>
    %cst_21 = arith.constant dense<0.000000e+00> : vector<8xf32>
    %33 = vector.multi_reduction <add>, %32, %cst_21 [1] : vector<8x128xf32> to vector<8xf32>
    %34 = vector.shape_cast %33 : vector<8xf32> to vector<8x1xf32>
    %cst_22 = arith.constant 1.250000e-01 : f32
    %35 = vector.broadcast %cst_22 : f32 to vector<8x1xf32>
    %36 = arith.mulf %28, %35 : vector<8x1xf32>
    %37 = vector.broadcast %34 : vector<8x1xf32> to vector<8x128xf32>
    %38 = arith.addf %37, %21 : vector<8x128xf32>
    %39 = vector.broadcast %36 : vector<8x1xf32> to vector<8x128xf32>
    %40 = arith.subf %38, %39 : vector<8x128xf32>
    %c0_23 = arith.constant 0 : index
    %c0_24 = arith.constant 0 : index
    %41 = vector.load %arg8[%c0_23, %c0_24] : memref<8x128xf32, #tpu.memory_space<vmem>>, vector<8x128xf32>
    tpu.vector_store %arg8[%c0_23, %c0_24], %40 {strides = array<i32>} : memref<8x128xf32, #tpu.memory_space<vmem>>, vector<8x128xf32>,
    return
  }
  func.func @transform_0(%arg0: i32) -> (i32, i32) {
    %c0_i32 = arith.constant 0 : i32
    %c0_i32_0 = arith.constant 0 : i32
    return %arg0, %c0_i32 : i32, i32
  }
  func.func @transform_1(%arg0: i32) -> (i32, i32) {
    %c0_i32 = arith.constant 0 : i32
    %c0_i32_0 = arith.constant 0 : i32
    %c0_i32_1 = arith.constant 0 : i32
    return %c0_i32, %c0_i32_0 : i32, i32
  }
  func.func @transform_2(%arg0: i32) -> (i32, i32) {
    %c0_i32 = arith.constant 0 : i32
    %c0_i32_0 = arith.constant 0 : i32
    %c0_i32_1 = arith.constant 0 : i32
    return %c0_i32, %c0_i32_0 : i32, i32
  }
  func.func @transform_3(%arg0: i32) -> (i32, i32) {
    %c0_i32 = arith.constant 0 : i32
    %c0_i32_0 = arith.constant 0 : i32
    %c0_i32_1 = arith.constant 0 : i32
    return %c0_i32, %c0_i32_0 : i32, i32
  }
  func.func @transform_4(%arg0: i32) -> (i32, i32) {
    %c0_i32 = arith.constant 0 : i32
    %c0_i32_0 = arith.constant 0 : i32
    %c0_i32_1 = arith.constant 0 : i32
    return %c0_i32, %c0_i32_0 : i32, i32
  }
  func.func @transform_5(%arg0: i32) -> (i32, i32) {
    %c0_i32 = arith.constant 0 : i32
    %c0_i32_0 = arith.constant 0 : i32
    %c0_i32_1 = arith.constant 0 : i32
    return %c0_i32, %c0_i32_0 : i32, i32
  }
  func.func @transform_6(%arg0: i32) -> (i32, i32) {
    %c0_i32 = arith.constant 0 : i32
    %c0_i32_0 = arith.constant 0 : i32
    %c0_i32_1 = arith.constant 0 : i32
    return %c0_i32, %c0_i32_0 : i32, i32
  }
  func.func @transform_7(%arg0: i32) -> (i32, i32) {
    %c0_i32 = arith.constant 0 : i32
    %c0_i32_0 = arith.constant 0 : i32
    return %arg0, %c0_i32 : i32, i32
  }
}

</mosaic_0001>

<bundles_post_ra>
// kernel: dueling_forward.1
= control target key start
LH: loop header
LB: loop body
LE: loop exit
PB: predicated region body
PF: predicated region fallthrough
CT: control target
= control target key end

     0   :  { %v559_v1 = vmov 0.0   ;;  %vm560_vm0 = vmmov 0   ;;  %s728_s0 = inlined_call_operand.vmem [shape: bf16[8,128], index: 0, kind: input, shape index: {}]   ;;  %s729_s1 = inlined_call_operand.vmem [shape: bf16[128,128], index: 1, kind: input, shape index: {}]   ;;  %s730_s2 = inlined_call_operand.vmem [shape: f32[1,128], index: 2, kind: input, shape index: {}]   ;;  %s731_s3 = inlined_call_operand.vmem [shape: bf16[128,128], index: 3, kind: input, shape index: {}]   ;;  %s732_s4 = inlined_call_operand.vmem [shape: f32[1,128], index: 4, kind: input, shape index: {}]   ;;  %s733_s5 = inlined_call_operand.vmem [shape: bf16[128,128], index: 5, kind: input, shape index: {}]   ;;  %s734_s6 = inlined_call_operand.vmem [shape: f32[1,128], index: 6, kind: input, shape index: {}]   ;;  %s735_s7 = inlined_call_operand.hbm [shape: f32[8,128], index: 7, kind: output, shape index: {}]  }
   0x1   :  { %v511_v0 = vld [vmem:[%s729_s1] sm:$0xff]   ;;  %448 = vmatprep.subr.bf16.mxu0 %v559_v1  ;;  %468 = vmatprep.subr.bf16.mxu1 %v559_v1  ;;  %v512_v2 = vld [vmem:[%s729_s1 + $0x8] sm:$0xff]   ;;  %v513_v3 = vld [vmem:[%s729_s1 + $0x10] sm:$0xff]  }
   0x2   :  { %449 = vmatpush3.bf16.msra.mxu0 %v511_v0  ;;  %464 = vmatprep.mubr.msk.bf16.mxu0 %vm560_vm0, %v559_v1  ;;  %v519_v4 = vld [vmem:[%s731_s3] sm:$0xff]   ;;  %v514_v5 = vld [vmem:[%s729_s1 + $0x18] sm:$0xff]   ;;  %v520_v6 = vld [vmem:[%s731_s3 + $0x8] sm:$0xff]  }
   0x3   :  { %450 = vmatprep.subr.bf16.mxu0 %v559_v1  ;;  %484 = vmatprep.mubr.msk.bf16.mxu1 %vm560_vm0, %v559_v1  ;;  %v515_v7 = vld [vmem:[%s729_s1 + $0x20] sm:$0xff]   ;;  %v521_v8 = vld [vmem:[%s731_s3 + $0x10] sm:$0xff]   ;;  %v516_v9 = vld [vmem:[%s729_s1 + $0x28] sm:$0xff]  }
   0x4   :  { %469 = vmatpush3.bf16.msra.mxu1 %v519_v4  ;;  %v522_v10 = vld [vmem:[%s731_s3 + $0x18] sm:$0xff]  }
   0x5   :  { %470 = vmatprep.subr.bf16.mxu1 %v559_v1 }
   0x6   :  { %451 = vmatpush3.bf16.msra.mxu0 %v512_v2 }
   0x7   :  { %452 = vmatprep.subr.bf16.mxu0 %v559_v1 }
   0x8   :  { %471 = vmatpush3.bf16.msra.mxu1 %v520_v6 }
   0x9   :  { %472 = vmatprep.subr.bf16.mxu1 %v559_v1 }
   0xa   :  { %453 = vmatpush3.bf16.msra.mxu0 %v513_v3 }
   0xb   :  { %454 = vmatprep.subr.bf16.mxu0 %v559_v1 }
   0xc   :  { %473 = vmatpush3.bf16.msra.mxu1 %v521_v8 }
   0xd   :  { %474 = vmatprep.subr.bf16.mxu1 %v559_v1 }
   0xe   :  { %455 = vmatpush3.bf16.msra.mxu0 %v514_v5 }
   0xf   :  { %456 = vmatprep.subr.bf16.mxu0 %v559_v1 }
  0x12   :  { %457 = vmatpush3.bf16.msra.mxu0 %v515_v7 }
  0x13   :  { %458 = vmatprep.subr.bf16.mxu0 %v559_v1 }
  0x14   :  { %12 = vsyncpa [#allocation3], 0  ;;  %v517_v11 = vld [vmem:[%s729_s1 + $0x30] sm:$0xff]   ;;  %475 = vmatpush3.bf16.msra.mxu1 %v522_v10  ;;  %v523_v12 = vld [vmem:[%s731_s3 + $0x20] sm:$0xff]   ;;  %v366_v42 = vlaneseq }
  0x15   :  { %476 = vmatprep.subr.bf16.mxu1 %v559_v1  ;;  %v518_v13 = vld [vmem:[%s729_s1 + $0x38] sm:$0xff]   ;;  %v524_v14 = vld [vmem:[%s731_s3 + $0x28] sm:$0xff]   ;;  %v28_v15 = vld [vmem:[%s728_s0] sm:$0xf] }
  0x16   :  { %459 = vmatpush3.bf16.msra.mxu0 %v516_v9  ;;  %v525_v16 = vld [vmem:[%s731_s3 + $0x30] sm:$0xff]   ;;  %v526_v17 = vld [vmem:[%s731_s3 + $0x38] sm:$0xff]   ;;  %v527_v18 = vld [vmem:[%s733_s5] sm:$0xff]   ;;  %v367_v43 = vand.u32 127, %v366_v42 }
  0x17   :  { %460 = vmatprep.subr.bf16.mxu0 %v559_v1  ;;  %v528_v19 = vld [vmem:[%s733_s5 + $0x8] sm:$0xff]   ;;  %v529_v20 = vld [vmem:[%s733_s5 + $0x10] sm:$0xff]   ;;  %v530_v21 = vld [vmem:[%s733_s5 + $0x18] sm:$0xff]  }
  0x18   :  { %477 = vmatpush3.bf16.msra.mxu1 %v523_v12  ;;  %v531_v22 = vld [vmem:[%s733_s5 + $0x20] sm:$0xff]   ;;  %v532_v23 = vld [vmem:[%s733_s5 + $0x28] sm:$0xff]   ;;  %v533_v32 = vld [vmem:[%s733_s5 + $0x30] sm:$0xff]   ;;  %vm368_vm1 = vcmp.lt.s32.totalorder %v367_v43, 8  ;;  %vm372_vm2 = vcmp.eq.s32.totalorder %v367_v43, 8 }
  0x19   :  { %478 = vmatprep.subr.bf16.mxu1 %v559_v1  ;;  %v394_v24 = vld [vmem:[%s730_s2] ss:$0 sm:$0xff]  ;;  %v534_v33 = vld [vmem:[%s733_s5 + $0x38] sm:$0xff]  }
  0x1a   :  { %461 = vmatpush3.bf16.msra.mxu0 %v517_v11  ;;  %v403_v34 = vld [vmem:[%s732_s4] ss:$0 sm:$0xff]  ;;  %s561_s4 = smov [#allocation2]  }
  0x1b   :  { %462 = vmatprep.subr.bf16.mxu0 %v559_v1  ;;  %v412_v44 = vld [vmem:[%s734_s6] ss:$0 sm:$0xff]  ;;  %s386_s5 = sshll.u32 %s561_s4, 4  ;;  %s387_s5 = int_to_ptr.vmem [resolvable:$true] %s386_s5 }
  0x1c   :  { %479 = vmatpush3.bf16.msra.mxu1 %v524_v14  ;;  %s535_s6 = scalar_lea.vmem %s387_s5, 128  ;;  %p540_p1 = scmp.lt.s32.totalorder %s387_s5, %s387_s5 }
  0x1d   :  { %480 = vmatprep.subr.bf16.mxu1 %v559_v1  ;;  %p536_p0 = scmp.ne.s32.totalorder %s387_s5, %s535_s6  ;;  %p541_p2 = scmp.lt.s32.totalorder %s535_s6, %s535_s6 }
  0x1e   :  { %463 = vmatpush3.bf16.msra.mxu0 %v518_v13 }
  0x1f   :  { %488 = vmatprep.subr.bf16.mxu0 %v559_v1  ;;  %p542_p3 = por %p541_p2, %p540_p1 }
  0x20   :  { %481 = vmatpush3.bf16.msra.mxu1 %v525_v16 }
  0x21   :  { %465 = vmatmul.mubr.bf16.vlgmr.msra.gmra.mrb[0].mxu0 %v28_v15  ;;  %482 = vmatprep.subr.bf16.mxu1 %v559_v1  ;;  %p543_p4 = pnand %p542_p3, %p536_p0 }
  0x22   :  { %504 = vmatprep.mubr.msk.bf16.mxu0 %vm560_vm0, %v559_v1  ;;  %489 = vmatpush3.bf16.msra.mxu0 %v527_v18 }
  0x23   :  { %490 = vmatprep.subr.bf16.mxu0 %v559_v1 }
  0x24   :  { %483 = vmatpush3.bf16.msra.mxu1 %v526_v17 }
  0x26   :  { %491 = vmatpush3.bf16.msra.mxu0 %v528_v19 }
  0x27   :  { %492 = vmatprep.subr.bf16.mxu0 %v559_v1 }
  0x2a   :  { %493 = vmatpush3.bf16.msra.mxu0 %v529_v20 }
  0x2b   :  { %494 = vmatprep.subr.bf16.mxu0 %v559_v1 }
  0x2e   :  { %495 = vmatpush3.bf16.msra.mxu0 %v530_v21 }
  0x2f   :  { %496 = vmatprep.subr.bf16.mxu0 %v559_v1 }
  0x32   :  { %497 = vmatpush3.bf16.msra.mxu0 %v531_v22 }
  0x33   :  { %498 = vmatprep.subr.bf16.mxu0 %v559_v1 }
  0x36   :  { %499 = vmatpush3.bf16.msra.mxu0 %v532_v23 }
  0x37   :  { %500 = vmatprep.subr.bf16.mxu0 %v559_v1 }
  0x3a   :  { %501 = vmatpush3.bf16.msra.mxu0 %v533_v32 }
  0x3b   :  { %502 = vmatprep.subr.bf16.mxu0 %v559_v1 }
  0x3e   :  { %503 = vmatpush3.bf16.msra.mxu0 %v534_v33 }
  0xf4   :  { %v134_v25 = vpop.f32.mrb[0].mxu0 }
  0xf5   :  { %v135_v26 = vadd.f32 %v394_v24, %v134_v25  ;;  %v466_v27 = vpop.f32.mrb[1].mxu0 }
  0xf6   :  { %v137_v28 = vpop.f32.mrb[2].mxu0 }
  0xf7   :  { %v140_v29 = vmax.f32 %v135_v26, 0.0  ;;  %v467_v30 = vpop.f32.mrb[3].mxu0 }
  0xf9   :  { %v141_v31 = vpack.c.bf16 %v140_v29, %v140_v29 }
  0xfb   :  { %485 = vmatmul.mubr.bf16.vlgmr.msra.gmra.mrb[0].mxu1 %v141_v31 }
 0x1ce   :  { %v247_v35 = vpop.f32.mrb[0].mxu1 }
 0x1cf   :  { %v248_v36 = vadd.f32 %v403_v34, %v247_v35  ;;  %v486_v37 = vpop.f32.mrb[1].mxu1 }
 0x1d0   :  { %v250_v38 = vpop.f32.mrb[2].mxu1 }
 0x1d1   :  { %v253_v39 = vmax.f32 %v248_v36, 0.0  ;;  %v487_v40 = vpop.f32.mrb[3].mxu1 }
 0x1d3   :  { %v254_v41 = vpack.c.bf16 %v253_v39, %v253_v39 }
 0x1d5   :  { %505 = vmatmul.mubr.bf16.vlgmr.msra.gmra.mrb[4].mxu0 %v254_v41 }
 0x2a8   :  { %v360_v45 = vpop.f32.mrb[4].mxu0 }
 0x2a9   :  { %v361_v46 = vadd.f32 %v412_v44, %v360_v45  ;;  %v506_v47 = vpop.f32.mrb[5].mxu0 }
 0x2aa   :  { %v363_v48 = vpop.f32.mrb[6].mxu0 }
 0x2ab   :  { %v507_v49 = vpop.f32.mrb[7].mxu0  ;;  %v369_v50 = vsel %vm368_vm1, %v361_v46, 0.0  ;;  %v373_v51 = vsel %vm372_vm2, %v361_v46, 0.0 }
 0x2ac   :  { %370 = vadd.xlane.f32.xlu0 %v369_v50 }
 0x2b0   :  { %374 = vadd.xlane.f32.xlu0 %v373_v51 }
 0x339   :  { %v371_v52 = vpop.xlane.xlu0 %370 }
 0x33a   :  { %v376_v54 = vmul.f32 0.125, %v371_v52 }
 0x33d   :  { %v375_v53 = vpop.xlane.xlu0 %374 }
 0x33e   :  { %v377_v55 = vadd.f32 %v375_v53, %v361_v46 }
 0x340   :  { %v378_v56 = vsub.f32 %v377_v55, %v376_v54 }
 0x342   :  { %379 = vst [vmem:[#allocation2] sm:$0xff] %v378_v56 }
 0x343   :  { %546 = shalt.err (!%p543_p4)
}
 0x344   :  { %s547_s8 = scalar_lea.hbm %s735_s7, 128 }
 0x345   :  { %p548_p5 = scmp.ne.s32.totalorder %s735_s7, %s547_s8  ;;  %p551_p6 = scmp.lt.u32.totalorder %s547_s8, %s735_s7 }
 0x347   :  { %p553_p7 = pnand %p551_p6, %p548_p5 }
 0x349   :  { %556 = shalt.err (!%p553_p7)
}
 0x34a   :  { %389 = dma.vmem_to_hbm [thread:$0]  %s387_s5, 128, %s735_s7, [#allocation3]  }
 0x34b   :  { %557 = dma.done.wait [#allocation3], 128  }
 0x34c   :  { %558 = vsyncadd [#allocation3], 4294967168 }
 0x34d   :  { %393 = vsyncpa [#allocation3], 1 }

</bundles_post_ra>
